<compile_context>
chip_gen: v6e
topology: v6e:2x2x1
jax: 0.10.0
libtpu: 0.0.40
codegen_flags: <defaults>
</compile_context>

<pallas_src>
import jax
import jax.numpy as jnp
from jax.experimental import pallas as pl
from jax.experimental.pallas import tpu as pltpu


def _round_up(x, m):
    return (x + m - 1) // m * m


def nhits_block_kernel(
    x_ref,
    w1_ref, b1_ref,
    w2_ref, b2_ref,
    w3_ref, b3_ref,
    wo_ref, bo_ref,          # fused [backcast | forecast] head
    out_ref,
):
    """fc_stack (3x Linear+ReLU) followed by the fused backcast/forecast head."""
    cdt = w1_ref.dtype  # compute dtype (bf16)

    x = x_ref[...].astype(cdt)
    h = jnp.dot(x, w1_ref[...], preferred_element_type=jnp.float32) + b1_ref[...]
    h = jnp.maximum(h, 0.0).astype(cdt)
    h = jnp.dot(h, w2_ref[...], preferred_element_type=jnp.float32) + b2_ref[...]
    h = jnp.maximum(h, 0.0).astype(cdt)
    h = jnp.dot(h, w3_ref[...], preferred_element_type=jnp.float32) + b3_ref[...]
    h = jnp.maximum(h, 0.0).astype(cdt)

    out = jnp.dot(h, wo_ref[...], preferred_element_type=jnp.float32) + bo_ref[...]
    out_ref[...] = out.astype(out_ref.dtype)


def nhits_block_forward(x, params, *, max_tile_batch=512,
                        compute_dtype=jnp.bfloat16):
    """Run the NHITSBlock forward via the Pallas kernel.

    x: (batch, input_size) float32
    params: dict of f32 weights in (in, out) layout, biases in (1, out) layout.
    Returns (backcast, forecast): (batch, input_size), (batch, output_size).
    """
    batch, input_size = x.shape
    hidden = params["w1"].shape[1]
    output_size = params["wf"].shape[1]
    d_out = input_size + output_size
    out_dtype = x.dtype
    wbytes = jnp.dtype(compute_dtype).itemsize
    xbytes = jnp.dtype(x.dtype).itemsize

    # ---- fused head + dtype handling -------------------------------------
    w1 = params["w1"].astype(compute_dtype)
    w2 = params["w2"].astype(compute_dtype)
    w3 = params["w3"].astype(compute_dtype)
    wo = jnp.concatenate([params["wb"], params["wf"]], axis=1).astype(compute_dtype)
    b1 = params["b1"].astype(jnp.float32)
    b2 = params["b2"].astype(jnp.float32)
    b3 = params["b3"].astype(jnp.float32)
    bo = jnp.concatenate([params["bb"], params["bf"]], axis=1).astype(jnp.float32)

    # ---- batch tile choice (budgeted for v7x's 64 MiB physical VMEM) -----
    def vmem_estimate(tb_):
        weights = (input_size * hidden + 2 * hidden * hidden + hidden * d_out) * wbytes
        biases = (3 * hidden + d_out) * 4
        resident = 2 * (weights + biases)                     # default double-buffering
        stream = (2 * tb_ * input_size * xbytes                # x tiles (f32, 2 bufs)
                  + 2 * tb_ * d_out * jnp.dtype(out_dtype).itemsize)
        inter = 4 * tb_ * max(hidden, d_out) * 4              # f32 intermediates headroom
        return resident + stream + inter

    tb = _round_up(min(max_tile_batch, _round_up(batch, 8)), 8)
    budget = 40 * 1024 * 1024
    while tb > 8 and vmem_estimate(tb) > budget:
        tb = _round_up(tb // 2, 8)

    padded_batch = _round_up(batch, tb)
    x_p = x
    if padded_batch != batch:
        x_p = jnp.pad(x_p, ((0, padded_batch - batch), (0, 0)))

    grid = (padded_batch // tb,)

    def resident(shape):  # weight/bias blocks: full array, constant index -> loaded once
        return pl.BlockSpec(shape, lambda i: (0, 0))

    out = pl.pallas_call(
        nhits_block_kernel,
        grid=grid,
        in_specs=[
            pl.BlockSpec((tb, input_size), lambda i: (i, 0)),      # x: streamed f32
            resident((input_size, hidden)), resident((1, hidden)),
            resident((hidden, hidden)), resident((1, hidden)),
            resident((hidden, hidden)), resident((1, hidden)),
            resident((hidden, d_out)), resident((1, d_out)),
        ],
        out_specs=pl.BlockSpec((tb, d_out), lambda i: (i, 0)),      # fused, lane-dense
        out_shape=jax.ShapeDtypeStruct((padded_batch, d_out), out_dtype),
        compiler_params=pltpu.CompilerParams(
            dimension_semantics=("parallel",),
            vmem_limit_bytes=int(min(48 * 1024 * 1024,
                                     max(32 * 1024 * 1024, 2 * vmem_estimate(tb)))),
        ),
    )(x_p, w1, b1, w2, b2, w3, b3, wo, bo)

    out = out[:batch]
    return out[:, :input_size], out[:, input_size:]


def init_params(key, input_size, output_size, hidden_size):
    """Deterministic init mirroring PyTorch Linear's uniform bounds."""
    def linear(k, fan_in, fan_out):
        kw, kb = jax.random.split(k)
        bound = 1.0 / jnp.sqrt(jnp.float32(fan_in))
        w = jax.random.uniform(kw, (fan_in, fan_out), jnp.float32, -bound, bound)
        b = jax.random.uniform(kb, (1, fan_out), jnp.float32, -bound, bound)
        return w, b

    k1, k2, k3, kb, kf = jax.random.split(key, 5)
    w1, b1 = linear(k1, input_size, hidden_size)
    w2, b2 = linear(k2, hidden_size, hidden_size)
    w3, b3 = linear(k3, hidden_size, hidden_size)
    wb, bb = linear(kb, hidden_size, input_size)
    wf, bf = linear(kf, hidden_size, output_size)
    return dict(w1=w1, b1=b1, w2=w2, b2=b2, w3=w3, b3=b3,
                wb=wb, bb=bb, wf=wf, bf=bf)


def reference_forward(x, p, compute_dtype=jnp.bfloat16):
    """Pure-JAX reference with the same bf16-compute / f32-accumulate scheme."""
    cdt = compute_dtype
    h = x.astype(cdt)
    h = jnp.dot(h, p["w1"].astype(cdt), preferred_element_type=jnp.float32) + p["b1"]
    h = jnp.maximum(h, 0.0).astype(cdt)
    h = jnp.dot(h, p["w2"].astype(cdt), preferred_element_type=jnp.float32) + p["b2"]
    h = jnp.maximum(h, 0.0).astype(cdt)
    h = jnp.dot(h, p["w3"].astype(cdt), preferred_element_type=jnp.float32) + p["b3"]
    h = jnp.maximum(h, 0.0).astype(cdt)
    back = jnp.dot(h, p["wb"].astype(cdt), preferred_element_type=jnp.float32) + p["bb"]
    fore = jnp.dot(h, p["wf"].astype(cdt), preferred_element_type=jnp.float32) + p["bf"]
    return back.astype(x.dtype), fore.astype(x.dtype)


if __name__ == "__main__":
    # Small demo shapes (batch intentionally not a multiple of the tile so the
    # padding/slice path is exercised).
    batch = 12
    input_size = 16
    output_size = 8
    hidden_size = 32

    key = jax.random.PRNGKey(0)
    kx, kp = jax.random.split(key)
    x = jax.random.normal(kx, (batch, input_size), jnp.float32)
    params = init_params(kp, input_size, output_size, hidden_size)

    backcast, forecast = nhits_block_forward(x, params)
    backcast = jax.block_until_ready(backcast)
    forecast = jax.block_until_ready(forecast)

    ref_back, ref_fore = reference_forward(x, params)
    assert backcast.shape == (batch, input_size)
    assert forecast.shape == (batch, output_size)
    assert jnp.allclose(backcast, ref_back, atol=1e-2, rtol=1e-2)
    assert jnp.allclose(forecast, ref_fore, atol=1e-2, rtol=1e-2)

    print("KERNEL_OK")
</pallas_src>

<mosaic_0001>
module attributes {stable_mosaic.version = 11 : i64} {
  func.func @nhits_block_kernel(%arg0: i32, %arg1: memref<16x16xf32, #tpu.memory_space<vmem>>, %arg2: memref<16x32xbf16, #tpu.memory_space<vmem>>, %arg3: memref<1x32xf32, #tpu.memory_space<vmem>>, %arg4: memref<32x32xbf16, #tpu.memory_space<vmem>>, %arg5: memref<1x32xf32, #tpu.memory_space<vmem>>, %arg6: memref<32x32xbf16, #tpu.memory_space<vmem>>, %arg7: memref<1x32xf32, #tpu.memory_space<vmem>>, %arg8: memref<32x24xbf16, #tpu.memory_space<vmem>>, %arg9: memref<1x24xf32, #tpu.memory_space<vmem>>, %arg10: memref<16x24xf32, #tpu.memory_space<vmem>>) attributes {dimension_semantics = [#tpu.dimension_semantics<parallel>], iteration_bounds = array<i64: 1>, scalar_prefetch = 0 : i64, scratch_operands = 0 : i64, tpu.core_type = #tpu.core_type<tc>, window_params = [{transform_indices = @transform_0, window_bounds = array<i64: 16, 16>}, {pipeline_mode = #tpu.pipeline_mode<synchronous>, transform_indices = @transform_1, window_bounds = array<i64: 16, 32>}, {pipeline_mode = #tpu.pipeline_mode<synchronous>, transform_indices = @transform_2, window_bounds = array<i64: 1, 32>}, {pipeline_mode = #tpu.pipeline_mode<synchronous>, transform_indices = @transform_3, window_bounds = array<i64: 32, 32>}, {pipeline_mode = #tpu.pipeline_mode<synchronous>, transform_indices = @transform_4, window_bounds = array<i64: 1, 32>}, {pipeline_mode = #tpu.pipeline_mode<synchronous>, transform_indices = @transform_5, window_bounds = array<i64: 32, 32>}, {pipeline_mode = #tpu.pipeline_mode<synchronous>, transform_indices = @transform_6, window_bounds = array<i64: 1, 32>}, {pipeline_mode = #tpu.pipeline_mode<synchronous>, transform_indices = @transform_7, window_bounds = array<i64: 32, 24>}, {pipeline_mode = #tpu.pipeline_mode<synchronous>, transform_indices = @transform_8, window_bounds = array<i64: 1, 24>}, {transform_indices = @transform_9, window_bounds = array<i64: 16, 24>}]} {
    %c0 = arith.constant 0 : index
    %c0_0 = arith.constant 0 : index
    %0 = vector.load %arg1[%c0, %c0_0] : memref<16x16xf32, #tpu.memory_space<vmem>>, vector<16x16xf32>
    %1 = arith.truncf %0 : vector<16x16xf32> to vector<16x16xbf16>
    %c0_1 = arith.constant 0 : index
    %c0_2 = arith.constant 0 : index
    %2 = vector.load %arg2[%c0_1, %c0_2] : memref<16x32xbf16, #tpu.memory_space<vmem>>, vector<16x32xbf16>
    %cst = arith.constant dense<0.000000e+00> : vector<16x32xf32>
    %3 = tpu.matmul %1, %2, %cst {dimension_numbers = #tpu.dot_dimension_numbers<[1], [0], [0], [1], [0, 0, 1, 1], [], []>} : vector<16x16xbf16>, vector<16x32xbf16>, vector<16x32xf32> -> vector<16x32xf32>
    %c0_3 = arith.constant 0 : index
    %c0_4 = arith.constant 0 : index
    %4 = vector.load %arg3[%c0_3, %c0_4] : memref<1x32xf32, #tpu.memory_space<vmem>>, vector<1x32xf32>
    %5 = vector.broadcast %4 : vector<1x32xf32> to vector<16x32xf32>
    %6 = arith.addf %3, %5 : vector<16x32xf32>
    %cst_5 = arith.constant 0.000000e+00 : f32
    %7 = vector.broadcast %cst_5 : f32 to vector<16x32xf32>
    %8 = arith.maximumf %6, %7 : vector<16x32xf32>
    %9 = arith.truncf %8 : vector<16x32xf32> to vector<16x32xbf16>
    %c0_6 = arith.constant 0 : index
    %c0_7 = arith.constant 0 : index
    %10 = vector.load %arg4[%c0_6, %c0_7] : memref<32x32xbf16, #tpu.memory_space<vmem>>, vector<32x32xbf16>
    %cst_8 = arith.constant dense<0.000000e+00> : vector<16x32xf32>
    %11 = tpu.matmul %9, %10, %cst_8 {dimension_numbers = #tpu.dot_dimension_numbers<[1], [0], [0], [1], [0, 0, 1, 1], [], []>} : vector<16x32xbf16>, vector<32x32xbf16>, vector<16x32xf32> -> vector<16x32xf32>
    %c0_9 = arith.constant 0 : index
    %c0_10 = arith.constant 0 : index
    %12 = vector.load %arg5[%c0_9, %c0_10] : memref<1x32xf32, #tpu.memory_space<vmem>>, vector<1x32xf32>
    %13 = vector.broadcast %12 : vector<1x32xf32> to vector<16x32xf32>
    %14 = arith.addf %11, %13 : vector<16x32xf32>
    %cst_11 = arith.constant 0.000000e+00 : f32
    %15 = vector.broadcast %cst_11 : f32 to vector<16x32xf32>
    %16 = arith.maximumf %14, %15 : vector<16x32xf32>
    %17 = arith.truncf %16 : vector<16x32xf32> to vector<16x32xbf16>
    %c0_12 = arith.constant 0 : index
    %c0_13 = arith.constant 0 : index
    %18 = vector.load %arg6[%c0_12, %c0_13] : memref<32x32xbf16, #tpu.memory_space<vmem>>, vector<32x32xbf16>
    %cst_14 = arith.constant dense<0.000000e+00> : vector<16x32xf32>
    %19 = tpu.matmul %17, %18, %cst_14 {dimension_numbers = #tpu.dot_dimension_numbers<[1], [0], [0], [1], [0, 0, 1, 1], [], []>} : vector<16x32xbf16>, vector<32x32xbf16>, vector<16x32xf32> -> vector<16x32xf32>
    %c0_15 = arith.constant 0 : index
    %c0_16 = arith.constant 0 : index
    %20 = vector.load %arg7[%c0_15, %c0_16] : memref<1x32xf32, #tpu.memory_space<vmem>>, vector<1x32xf32>
    %21 = vector.broadcast %20 : vector<1x32xf32> to vector<16x32xf32>
    %22 = arith.addf %19, %21 : vector<16x32xf32>
    %cst_17 = arith.constant 0.000000e+00 : f32
    %23 = vector.broadcast %cst_17 : f32 to vector<16x32xf32>
    %24 = arith.maximumf %22, %23 : vector<16x32xf32>
    %25 = arith.truncf %24 : vector<16x32xf32> to vector<16x32xbf16>
    %c0_18 = arith.constant 0 : index
    %c0_19 = arith.constant 0 : index
    %26 = vector.load %arg8[%c0_18, %c0_19] : memref<32x24xbf16, #tpu.memory_space<vmem>>, vector<32x24xbf16>
    %cst_20 = arith.constant dense<0.000000e+00> : vector<16x24xf32>
    %27 = tpu.matmul %25, %26, %cst_20 {dimension_numbers = #tpu.dot_dimension_numbers<[1], [0], [0], [1], [0, 0, 1, 1], [], []>} : vector<16x32xbf16>, vector<32x24xbf16>, vector<16x24xf32> -> vector<16x24xf32>
    %c0_21 = arith.constant 0 : index
    %c0_22 = arith.constant 0 : index
    %28 = vector.load %arg9[%c0_21, %c0_22] : memref<1x24xf32, #tpu.memory_space<vmem>>, vector<1x24xf32>
    %29 = vector.broadcast %28 : vector<1x24xf32> to vector<16x24xf32>
    %30 = arith.addf %27, %29 : vector<16x24xf32>
    %c0_23 = arith.constant 0 : index
    %c0_24 = arith.constant 0 : index
    %31 = vector.load %arg10[%c0_23, %c0_24] : memref<16x24xf32, #tpu.memory_space<vmem>>, vector<16x24xf32>
    tpu.vector_store %arg10[%c0_23, %c0_24], %30 {strides = array<i32>} : memref<16x24xf32, #tpu.memory_space<vmem>>, vector<16x24xf32>,
    return
  }
  func.func @transform_0(%arg0: i32) -> (i32, i32) {
    %c0_i32 = arith.constant 0 : i32
    %c0_i32_0 = arith.constant 0 : i32
    return %arg0, %c0_i32 : i32, i32
  }
  func.func @transform_1(%arg0: i32) -> (i32, i32) {
    %c0_i32 = arith.constant 0 : i32
    %c0_i32_0 = arith.constant 0 : i32
    %c0_i32_1 = arith.constant 0 : i32
    return %c0_i32, %c0_i32_0 : i32, i32
  }
  func.func @transform_2(%arg0: i32) -> (i32, i32) {
    %c0_i32 = arith.constant 0 : i32
    %c0_i32_0 = arith.constant 0 : i32
    %c0_i32_1 = arith.constant 0 : i32
    return %c0_i32, %c0_i32_0 : i32, i32
  }
  func.func @transform_3(%arg0: i32) -> (i32, i32) {
    %c0_i32 = arith.constant 0 : i32
    %c0_i32_0 = arith.constant 0 : i32
    %c0_i32_1 = arith.constant 0 : i32
    return %c0_i32, %c0_i32_0 : i32, i32
  }
  func.func @transform_4(%arg0: i32) -> (i32, i32) {
    %c0_i32 = arith.constant 0 : i32
    %c0_i32_0 = arith.constant 0 : i32
    %c0_i32_1 = arith.constant 0 : i32
    return %c0_i32, %c0_i32_0 : i32, i32
  }
  func.func @transform_5(%arg0: i32) -> (i32, i32) {
    %c0_i32 = arith.constant 0 : i32
    %c0_i32_0 = arith.constant 0 : i32
    %c0_i32_1 = arith.constant 0 : i32
    return %c0_i32, %c0_i32_0 : i32, i32
  }
  func.func @transform_6(%arg0: i32) -> (i32, i32) {
    %c0_i32 = arith.constant 0 : i32
    %c0_i32_0 = arith.constant 0 : i32
    %c0_i32_1 = arith.constant 0 : i32
    return %c0_i32, %c0_i32_0 : i32, i32
  }
  func.func @transform_7(%arg0: i32) -> (i32, i32) {
    %c0_i32 = arith.constant 0 : i32
    %c0_i32_0 = arith.constant 0 : i32
    %c0_i32_1 = arith.constant 0 : i32
    return %c0_i32, %c0_i32_0 : i32, i32
  }
  func.func @transform_8(%arg0: i32) -> (i32, i32) {
    %c0_i32 = arith.constant 0 : i32
    %c0_i32_0 = arith.constant 0 : i32
    %c0_i32_1 = arith.constant 0 : i32
    return %c0_i32, %c0_i32_0 : i32, i32
  }
  func.func @transform_9(%arg0: i32) -> (i32, i32) {
    %c0_i32 = arith.constant 0 : i32
    %c0_i32_0 = arith.constant 0 : i32
    return %arg0, %c0_i32 : i32, i32
  }
}

</mosaic_0001>

<bundles_post_ra>
// kernel: tpu_custom_call.1
= control target key start
LH: loop header
LB: loop body
LE: loop exit
PB: predicated region body
PF: predicated region fallthrough
CT: control target
= control target key end

     0   :  { %14 = vsyncpa [#allocation3], 0  ;;  %s600_s0 = inlined_call_operand.vmem [shape: f32[16,16], index: 0, kind: input, shape index: {}]   ;;  %s601_s1 = inlined_call_operand.hbm [shape: bf16[16,32], index: 1, kind: input, shape index: {}]   ;;  %s602_s2 = inlined_call_operand.vmem [shape: f32[1,32], index: 2, kind: input, shape index: {}]   ;;  %s603_s3 = inlined_call_operand.vmem [shape: bf16[32,32], index: 3, kind: input, shape index: {}]   ;;  %s604_s4 = inlined_call_operand.vmem [shape: f32[1,32], index: 4, kind: input, shape index: {}]   ;;  %s605_s5 = inlined_call_operand.hbm [shape: bf16[32,32], index: 5, kind: input, shape index: {}]   ;;  %s606_s6 = inlined_call_operand.vmem [shape: f32[1,32], index: 6, kind: input, shape index: {}]   ;;  %s607_s7 = inlined_call_operand.vmem [shape: bf16[32,24], index: 7, kind: input, shape index: {}]   ;;  %s608_s8 = inlined_call_operand.vmem [shape: f32[1,24], index: 8, kind: input, shape index: {}]   ;;  %s609_s9 = inlined_call_operand.hbm [shape: f32[16,24], index: 9, kind: output, shape index: {}]  }
   0x1   :  { %15 = vsyncpa [#allocation6], 0 }
   0x2   :  { %16 = vsyncpa [#allocation4], 0  ;;  %s495_s30 = smov [#allocation2]  }
   0x3   :  { %s24_s10 = sshll.u32 %s495_s30, 4  ;;  %s25_s10 = int_to_ptr.vmem [resolvable:$true] %s24_s10 }
   0x4   :  { %s437_s11 = scalar_lea.vmem %s25_s10, 128  ;;  %p442_p1 = scmp.lt.s32.totalorder %s25_s10, %s25_s10 }
   0x5   :  { %p438_p0 = scmp.ne.s32.totalorder %s25_s10, %s437_s11  ;;  %p443_p2 = scmp.lt.s32.totalorder %s437_s11, %s437_s11 }
   0x7   :  { %p444_p3 = por %p443_p2, %p442_p1 }
   0x9   :  { %p445_p4 = pnand %p444_p3, %p438_p0 }
   0xb   :  { %448 = shalt.err (!%p445_p4)
}
   0xc   :  { %s496_s12 = smov 64   ;;  %s497_s13 = smov 4  }
   0xd   :  { %30 = dma.hbm_to_vmem [thread:$0]  %s601_s1, 128, %s25_s10, [#allocation3], %s496_s12, %s496_s12, %s497_s13  }
   0xe   :  { %s498_s16 = smov [#allocation5]  }
   0xf   :  { %s42_s17 = sshll.u32 %s498_s16, 4  ;;  %s43_s17 = int_to_ptr.vmem [resolvable:$true] %s42_s17 }
  0x10   :  { %s457_s18 = scalar_lea.vmem %s43_s17, 256  ;;  %p462_p6 = scmp.lt.s32.totalorder %s43_s17, %s43_s17 }
  0x11   :  { %p458_p5 = scmp.ne.s32.totalorder %s43_s17, %s457_s18  ;;  %p463_p7 = scmp.lt.s32.totalorder %s457_s18, %s457_s18 }
  0x13   :  { %p464_p8 = por %p463_p7, %p462_p6 }
  0x15   :  { %p465_p9 = pnand %p464_p8, %p458_p5 }
  0x17   :  { %468 = shalt.err (!%p465_p9)
}
  0x18   :  { %48 = dma.hbm_to_vmem [thread:$0]  %s605_s5, 256, %s43_s17, [#allocation6], %s496_s12, %s496_s12, %s497_s13  }
  0x19   :  { %489 = dma.done.wait [#allocation3], 128  }
  0x1a   :  { %490 = vsyncadd [#allocation3], 4294967168 }
  0x1b   :  { %491 = dma.done.wait [#allocation6], 256  }
  0x1c   :  { %492 = vsyncadd [#allocation6], 4294967040  ;;  %v499_v0 = vmov 0.0   ;;  %vm500_vm0 = vmmov 0   ;;  %v422_v1 = vld [vmem:[#allocation2] sm:$0xff]   ;;  %v63_v3 = vld [vmem:[%s600_s0 + $0x8] sm:$0xff] }
  0x1d   :  { %383 = vmatprep.subr.bf16.mxu0 %v499_v0  ;;  %385 = vmatprep.mubr.msk.bf16.mxu0 %vm500_vm0, %v499_v0  ;;  %v62_v2 = vld [vmem:[%s600_s0] sm:$0xff]  ;;  %vm80_vm1 = vcmask 130048   ;;  %v423_v5 = vld [vmem:[%s603_s3 + $0x8] sm:$0xff]   ;;  %vm151_vm2 = vcmask 261120   ;;  %v425_v17 = vld [vmem:[#allocation5 + $0x8] sm:$0xff]   ;;  %vm336_vm3 = vcmask 195584  }
  0x1e   :  { %389 = vmatprep.subr.bf16.mxu1 %v499_v0  ;;  %393 = vmatprep.mubr.msk.bf16.mxu1 %vm500_vm0, %v499_v0  ;;  %v64_v4 = vpack.c.bf16 %v63_v3, %v62_v2  ;;  %v424_v6 = vld [vmem:[%s603_s3] sm:$0xff]   ;;  %v426_v18 = vld [vmem:[#allocation5] sm:$0xff]  }
  0x1f   :  { %384 = vmatpush3.bf16.msra.mxu0 %v422_v1  ;;  %390 = vmatpush3.bf16.msra.mxu1 %v423_v5  ;;  %v357_v7 = vld [vmem:[%s602_s2] ss:$0 sm:$0xff]  ;;  %v427_v29 = vld [vmem:[%s607_s7 + $0x8] sm:$0xff]  }
  0x20   :  { %397 = vmatprep.subr.bf16.mxu0 %v499_v0  ;;  %391 = vmatprep.subr.bf16.mxu1 %v499_v0  ;;  %v360_v19 = vld [vmem:[%s604_s4] ss:$0 sm:$0xff] }
  0x21   :  { %v428_v30 = vld [vmem:[%s607_s7] sm:$0xff]   ;;  %s501_s7 = smov [#allocation7]  }
  0x22   :  { %386 = vmatmul.mubr.msk.bf16.vlgmr.msra.gmra.mxu0 %vm80_vm1, %v64_v4  ;;  %v364_v31 = vld [vmem:[%s606_s6] ss:$0 sm:$0xff]  ;;  %s344_s6 = sshll.u32 %s501_s7, 4  ;;  %s345_s6 = int_to_ptr.vmem [resolvable:$true] %s344_s6 }
  0x23   :  { %401 = vmatprep.mubr.msk.bf16.mxu0 %vm500_vm0, %v499_v0  ;;  %392 = vmatpush3.bf16.msra.mxu1 %v424_v6  ;;  %v368_v41 = vld [vmem:[%s608_s8] ss:$0 sm:$0xff]  ;;  %s469_s14 = scalar_lea.vmem %s345_s6, 256  ;;  %p474_p11 = scmp.lt.s32.totalorder %s345_s6, %s345_s6 }
  0x24   :  { %405 = vmatprep.subr.bf16.mxu1 %v499_v0  ;;  %398 = vmatpush3.bf16.msra.mxu0 %v425_v17  ;;  %p470_p10 = scmp.ne.s32.totalorder %s345_s6, %s469_s14  ;;  %p475_p12 = scmp.lt.s32.totalorder %s469_s14, %s469_s14 }
  0x25   :  { %399 = vmatprep.subr.bf16.mxu0 %v499_v0 }
  0x26   :  { %p476_p13 = por %p475_p12, %p474_p11 }
  0x28   :  { %400 = vmatpush3.bf16.msra.mxu0 %v426_v18  ;;  %p477_p0 = pnand %p476_p13, %p470_p10 }
  0xe2   :  { %v118_v8 = vpop.f32.mrf.mxu0 }
  0xe3   :  { %v119_v10 = vadd.f32 %v357_v7, %v118_v8 }
  0xe4   :  { %v387_v9 = vpop.f32.mrf.mxu0 }
  0xe5   :  { %v125_v14 = vmax.f32 %v119_v10, 0.0 }
  0xe6   :  { %v121_v11 = vpop.f32.mrf.mxu0 }
  0xe7   :  { %v122_v12 = vadd.f32 %v357_v7, %v121_v11 }
  0xe8   :  { %v388_v13 = vpop.f32.mrf.mxu0 }
  0xe9   :  { %v126_v15 = vmax.f32 %v122_v12, 0.0 }
  0xeb   :  { %v127_v16 = vpack.c.bf16 %v126_v15, %v125_v14 }
  0xed   :  { %394 = vmatmul.mubr.msk.bf16.vlgmr.msra.gmra.mxu1 %vm151_vm2, %v127_v16 }
  0xee   :  { %409 = vmatprep.mubr.msk.bf16.mxu1 %vm500_vm0, %v499_v0  ;;  %406 = vmatpush3.bf16.msra.mxu1 %v427_v29 }
  0xef   :  { %407 = vmatprep.subr.bf16.mxu1 %v499_v0 }
  0xf2   :  { %408 = vmatpush3.bf16.msra.mxu1 %v428_v30 }
 0x1ad   :  { %v189_v20 = vpop.f32.mrf.mxu1 }
 0x1ae   :  { %v190_v22 = vadd.f32 %v360_v19, %v189_v20 }
 0x1af   :  { %v395_v21 = vpop.f32.mrf.mxu1 }
 0x1b0   :  { %v196_v26 = vmax.f32 %v190_v22, 0.0 }
 0x1b1   :  { %v192_v23 = vpop.f32.mrf.mxu1 }
 0x1b2   :  { %v193_v24 = vadd.f32 %v360_v19, %v192_v23 }
 0x1b3   :  { %v396_v25 = vpop.f32.mrf.mxu1 }
 0x1b4   :  { %v197_v27 = vmax.f32 %v193_v24, 0.0 }
 0x1b6   :  { %v198_v28 = vpack.c.bf16 %v197_v27, %v196_v26 }
 0x1b8   :  { %402 = vmatmul.mubr.msk.bf16.vlgmr.msra.gmra.mxu0 %vm151_vm2, %v198_v28 }
 0x278   :  { %v259_v32 = vpop.f32.mrf.mxu0 }
 0x279   :  { %v260_v34 = vadd.f32 %v364_v31, %v259_v32 }
 0x27a   :  { %v403_v33 = vpop.f32.mrf.mxu0 }
 0x27b   :  { %v266_v38 = vmax.f32 %v260_v34, 0.0 }
 0x27c   :  { %v262_v35 = vpop.f32.mrf.mxu0 }
 0x27d   :  { %v263_v36 = vadd.f32 %v364_v31, %v262_v35 }
 0x27e   :  { %v404_v37 = vpop.f32.mrf.mxu0 }
 0x27f   :  { %v267_v39 = vmax.f32 %v263_v36, 0.0 }
 0x281   :  { %v268_v40 = vpack.c.bf16 %v267_v39, %v266_v38 }
 0x283   :  { %410 = vmatmul.mubr.msk.bf16.vlgmr.msra.gmra.mxu1 %vm151_vm2, %v268_v40 }
 0x343   :  { %v329_v42 = vpop.f32.mrf.mxu1 }
 0x344   :  { %v330_v43 = vadd.f32 %v368_v41, %v329_v42 }
 0x345   :  { %v411_v44 = vpop.f32.mrf.mxu1 }
 0x346   :  { %337 = vst.msk [vmem:[#allocation7] sm:$0xff] %vm336_vm3, %v330_v43 }
 0x347   :  { %v332_v45 = vpop.f32.mrf.mxu1 }
 0x348   :  { %v333_v46 = vadd.f32 %v368_v41, %v332_v45 }
 0x349   :  { %v412_v47 = vpop.f32.mrf.mxu1 }
 0x34a   :  { %338 = vst.msk [vmem:[#allocation7 + $0x8] sm:$0xff] %vm336_vm3, %v333_v46 }
 0x34b   :  { %480 = shalt.err (!%p477_p0)
}
 0x34c   :  { %s502_s8 = smov 128   ;;  %s503_s15 = smov 8  }
 0x34d   :  { %350 = dma.vmem_to_hbm [thread:$0]  %s345_s6, 256, %s609_s9, [#allocation4], %s502_s8, %s502_s8, %s503_s15  }
 0x34e   :  { %493 = dma.done.wait [#allocation4], 256  }
 0x34f   :  { %494 = vsyncadd [#allocation4], 4294967040 }
 0x350   :  { %354 = vsyncpa [#allocation3], 1 }
 0x351   :  { %355 = vsyncpa [#allocation6], 1 }
 0x352   :  { %356 = vsyncpa [#allocation4], 1 }

</bundles_post_ra>
